<compile_context>
chip_gen: v6e
topology: v6e:2x2x1
jax: 0.10.0
libtpu: 0.0.40
codegen_flags: <defaults>
</compile_context>

<pallas_src>
import jax
import jax.numpy as jnp
from jax.experimental import pallas as pl
from jax.experimental.pallas import tpu as pltpu

_EPS = 1e-6


# ---------------------------------------------------------------------------
# Kernel: raw (uncentered) B x B Gram of one (B, td) feature tile.
# ---------------------------------------------------------------------------
def _raw_gram_kernel(x_ref, o_ref):
    x = x_ref[...].astype(jnp.float32)                                  # (B, td)
    # Contract the feature axis directly (no transpose materialized, no centering,
    # no masking -> purely DMA + MXU in the streaming loop).
    # TODO(synk): for very small B (<=8) a VPU pairwise-dot formulation may beat the
    # MXU here (review item); keep dot_general until bundle counts prove it binds.
    o_ref[0] = jax.lax.dot_general(
        x, x, (((1,), (1,)), ((), ())), preferred_element_type=jnp.float32)


# ---------------------------------------------------------------------------
# Generation-aware sizing helpers
# ---------------------------------------------------------------------------
def _vmem_limit_bytes():
    """~75% of physical VMEM: ~96 MiB on v5e/v6e (128 MiB), ~48 MiB on v7x (64 MiB)."""
    try:
        phys = int(pltpu.get_tpu_info().vmem_capacity_bytes)
    except Exception:
        phys = 64 * 1024 * 1024          # conservative fallback (v7x physical)
    return int(min(phys * 3 // 4, 96 * 1024 * 1024))


def _grid_semantics():
    """Use CORE_PARALLEL on v7x (2 TensorCores/chip) so the feature-tile grid is
    provably sharded across both cores; plain 'parallel' elsewhere."""
    try:
        kind = jax.devices()[0].device_kind.lower()
    except Exception:
        kind = ""
    if "v7" in kind or "7x" in kind:
        return (pltpu.CORE_PARALLEL,)
    return ("parallel",)


def _choose_block_cols(B, D, dtype, vmem_limit, max_block_bytes=16 << 20):
    """Byte-based feature-tile width (columns), scaled with B and dtype itemsize.

    VMEM per tile column ~= B * (2*itemsize  [double-buffered input block]
                                 + 4         [f32 working copy in the kernel]
                                 + 4)        [headroom for compiler temporaries]
    """
    itemsize = jnp.dtype(dtype).itemsize
    bytes_per_col = B * (2 * itemsize + 8)
    cols = (int(vmem_limit * 0.8)) // bytes_per_col
    cols = min(cols, max_block_bytes // max(1, B * itemsize))   # per-block byte cap
    cols = max(128, (cols // 128) * 128)                        # lane-aligned
    return D if D <= cols else cols


# ---------------------------------------------------------------------------
# Streaming pallas_call: per-tile raw Grams, one HBM pass over the input.
# ---------------------------------------------------------------------------
def _stream_raw_grams(x2d, td, nd, vmem_limit, dim_sem):
    B = x2d.shape[0]
    itemsize = jnp.dtype(x2d.dtype).itemsize
    cost = pl.CostEstimate(
        flops=int(2 * B * B * td * nd),
        transcendentals=0,
        bytes_accessed=int(B * td * nd * itemsize + nd * B * B * 4),
    )
    return pl.pallas_call(
        _raw_gram_kernel,
        out_shape=jax.ShapeDtypeStruct((nd, B, B), jnp.float32),
        grid_spec=pltpu.PrefetchScalarGridSpec(
            num_scalar_prefetch=0,
            grid=(nd,),
            in_specs=[pl.BlockSpec((B, td), lambda i: (0, i))],
            out_specs=pl.BlockSpec((1, B, B), lambda i: (i, 0, 0)),
        ),
        compiler_params=pltpu.CompilerParams(
            dimension_semantics=dim_sem,
            vmem_limit_bytes=int(vmem_limit),
        ),
        cost_estimate=cost,
    )(x2d)


def _gram(x2d, vmem_limit, dim_sem, block_cols=None):
    """Raw Gram G = X X^T (f32, B x B), streaming X from HBM exactly once."""
    B, D = x2d.shape
    td = block_cols if block_cols is not None else _choose_block_cols(
        B, D, x2d.dtype, vmem_limit)
    td = min(td, D)
    nd_full = D // td
    tail = D - nd_full * td

    # Main pass: blocks cover the first nd_full*td columns of the original array
    # (no slicing copy, no masking).  Partial Grams summed in the tiny epilogue.
    parts = _stream_raw_grams(x2d, td, nd_full, vmem_limit, dim_sem)
    g = jnp.sum(parts, axis=0)

    # Tail: remaining (<td) columns as one full-extent block (no masking needed).
    if tail:
        g_tail = _stream_raw_grams(x2d[:, nd_full * td:], tail, 1, vmem_limit, dim_sem)
        g = g + g_tail[0]
    return g


# ---------------------------------------------------------------------------
# Tiny O(B^2) epilogue in plain jnp (per review: drop the third pallas_call).
# ---------------------------------------------------------------------------
def _centered_normalized_gram(g_raw, B, eps=_EPS):
    # Centering correction (linear in G): Gc = Xc Xc^T from the raw Gram G = X X^T.
    rs = jnp.sum(g_raw, axis=1, keepdims=True)       # (B, 1) = G @ 1
    cs = jnp.sum(g_raw, axis=0, keepdims=True)       # (1, B) = 1^T @ G
    tot = jnp.sum(g_raw)
    gc = g_raw - (rs + cs) / B + tot / (B * B)
    # diag(Gc)[b] = ||xc_b||^2 ; clamp tiny negatives from f32 cancellation.
    d = jnp.sqrt(jnp.maximum(jnp.diagonal(gc), 0.0))
    inv = 1.0 / ((d[:, None] + eps) * (d[None, :] + eps))
    return gc * inv


# ---------------------------------------------------------------------------
# Wrapper: DiffLoss.forward(input1, input2)
# ---------------------------------------------------------------------------
def diff_loss(input1, input2, block_cols=None):
    B = input1.shape[0]
    x1 = input1.reshape(B, -1)           # torch .view(B, -1)
    x2 = input2.reshape(B, -1)
    D1, D2 = x1.shape[1], x2.shape[1]

    vmem_limit = _vmem_limit_bytes()
    dim_sem = _grid_semantics()

    g1 = _gram(x1, vmem_limit, dim_sem, block_cols)
    g2 = _gram(x2, vmem_limit, dim_sem, block_cols)

    gn1 = _centered_normalized_gram(g1, B)
    gn2 = _centered_normalized_gram(g2, B)
    # .detach() on the norms only affects autograd; forward value is identical.
    return jnp.sum(gn1 * gn2) / jnp.float32(D1 * D2)


# Pure-JAX reference (mirror of the PyTorch code) for verification.
def diff_loss_ref(input1, input2):
    B = input1.shape[0]
    x1 = input1.reshape(B, -1).astype(jnp.float32)
    x2 = input2.reshape(B, -1).astype(jnp.float32)
    x1 = x1 - jnp.mean(x1, axis=0, keepdims=True)
    x2 = x2 - jnp.mean(x2, axis=0, keepdims=True)
    x1 = x1 / (jnp.linalg.norm(x1, axis=1, keepdims=True) + 1e-6)
    x2 = x2 / (jnp.linalg.norm(x2, axis=1, keepdims=True) + 1e-6)
    return jnp.mean((x1.T @ x2) ** 2)


if __name__ == "__main__":
    key = jax.random.PRNGKey(0)
    k1, k2, k3, k4 = jax.random.split(key, 4)
    # DiffLoss has no parameters; inputs are two feature maps (NCHW).
    input1 = jax.random.normal(k1, (2, 4, 16, 16), dtype=jnp.float32)
    input2 = jax.random.normal(k2, (2, 4, 16, 16), dtype=jnp.float32)

    out = jax.block_until_ready(diff_loss(input1, input2))
    ref = jax.block_until_ready(diff_loss_ref(input1, input2))
    assert jnp.allclose(out, ref, rtol=1e-4, atol=1e-8), (out, ref)

    # Unequal flattened feature dims (D1 != D2).
    input3 = jax.random.normal(k3, (2, 3, 12, 12), dtype=jnp.float32)
    out2 = jax.block_until_ready(diff_loss(input1, input3))
    ref2 = jax.block_until_ready(diff_loss_ref(input1, input3))
    assert jnp.allclose(out2, ref2, rtol=1e-4, atol=1e-8), (out2, ref2)

    # Exercise the multi-tile streaming path and the non-dividing tail path by
    # forcing a small (128-aligned) tile width.
    input4 = jax.random.normal(k4, (2, 8, 16, 16), dtype=jnp.float32)
    out3 = jax.block_until_ready(diff_loss(input1, input4, block_cols=768))
    ref3 = jax.block_until_ready(diff_loss_ref(input1, input4))
    assert jnp.allclose(out3, ref3, rtol=1e-4, atol=1e-8), (out3, ref3)

    print("KERNEL_OK")
</pallas_src>

<mosaic_0001>
module attributes {stable_mosaic.version = 11 : i64} {
  func.func @_raw_gram_kernel(%arg0: i32, %arg1: memref<2x1024xf32, #tpu.memory_space<vmem>>, %arg2: memref<1x2x2xf32, #tpu.memory_space<vmem>>) attributes {dimension_semantics = [#tpu.dimension_semantics<parallel>], iteration_bounds = array<i64: 1>, scalar_prefetch = 0 : i64, scratch_operands = 0 : i64, tpu.core_type = #tpu.core_type<tc>, window_params = [{transform_indices = @transform_0, window_bounds = array<i64: 2, 1024>}, {transform_indices = @transform_1, window_bounds = array<i64: 1, 2, 2>}]} {
    %c0 = arith.constant 0 : index
    %c0_0 = arith.constant 0 : index
    %0 = vector.load %arg1[%c0, %c0_0] : memref<2x1024xf32, #tpu.memory_space<vmem>>, vector<2x1024xf32>
    %cst = arith.constant dense<0.000000e+00> : vector<2x2xf32>
    %1 = tpu.matmul %0, %0, %cst {dimension_numbers = #tpu.dot_dimension_numbers<[1], [1], [0], [0], [0, 0, 1, 0], [], []>} : vector<2x1024xf32>, vector<2x1024xf32>, vector<2x2xf32> -> vector<2x2xf32>
    %c0_1 = arith.constant 0 : index
    %c0_2 = arith.constant 0 : index
    %c0_3 = arith.constant 0 : index
    %2 = vector.load %arg2[%c0_1, %c0_2, %c0_3] : memref<1x2x2xf32, #tpu.memory_space<vmem>>, vector<1x2x2xf32>
    %3 = vector.shape_cast %2 : vector<1x2x2xf32> to vector<2x2xf32>
    %4 = vector.shape_cast %1 : vector<2x2xf32> to vector<1x2x2xf32>
    tpu.vector_store %arg2[%c0_1, %c0_2, %c0_3], %4 {strides = array<i32>} : memref<1x2x2xf32, #tpu.memory_space<vmem>>, vector<1x2x2xf32>,
    return
  }
  func.func @transform_0(%arg0: i32) -> (i32, i32) {
    %c0_i32 = arith.constant 0 : i32
    %c0_i32_0 = arith.constant 0 : i32
    return %c0_i32, %arg0 : i32, i32
  }
  func.func @transform_1(%arg0: i32) -> (i32, i32, i32) {
    %c0_i32 = arith.constant 0 : i32
    %c0_i32_0 = arith.constant 0 : i32
    %c0_i32_1 = arith.constant 0 : i32
    return %arg0, %c0_i32, %c0_i32_0 : i32, i32, i32
  }
}

</mosaic_0001>

<bundles_post_ra>
// kernel: tpu_custom_call.1
= control target key start
LH: loop header
LB: loop body
LE: loop exit
PB: predicated region body
PF: predicated region fallthrough
CT: control target
= control target key end

     0   :  { %6 = vsyncpa [#allocation3], 0  ;;  %s432_s0 = inlined_call_operand.hbm [shape: f32[2,1024], index: 0, kind: input, shape index: {}]   ;;  %s433_s1 = inlined_call_operand.hbm [shape: f32[1,2,2], index: 1, kind: output, shape index: {}]  }
   0x1   :  { %7 = vsyncpa [#allocation4], 0  ;;  %s413_s6 = smov [#allocation2]  }
   0x2   :  { %s14_s7 = sshll.u32 %s413_s6, 4  ;;  %s15_s7 = int_to_ptr.vmem [resolvable:$true] %s14_s7 }
   0x3   :  { %s377_s8 = scalar_lea.vmem %s15_s7, 256  ;;  %p382_p1 = scmp.lt.s32.totalorder %s15_s7, %s15_s7 }
   0x4   :  { %p378_p0 = scmp.ne.s32.totalorder %s15_s7, %s377_s8  ;;  %p383_p2 = scmp.lt.s32.totalorder %s377_s8, %s377_s8 }
   0x6   :  { %p384_p3 = por %p383_p2, %p382_p1 }
   0x8   :  { %p385_p4 = pnand %p384_p3, %p378_p0 }
   0xa   :  { %388 = shalt.err (!%p385_p4)
}
   0xb   :  { %17 = dma.hbm_to_vmem [thread:$0]  %s432_s0, 256, %s15_s7, [#allocation3]  }
   0xc   :  { %409 = dma.done.wait [#allocation3], 256  }
   0xd   :  { %410 = vsyncadd [#allocation3], 4294967040  ;;  %v29_v0 = vlaneseq  ;;  %v414_v1 = vmov 1983009808   ;;  %v21_v6 = vld [vmem:[#allocation2] sm:$0xff]  ;;  %v22_v7 = vld [vmem:[#allocation2 + $0x8] sm:$0xff] }
   0xe   :  { %v27_v2 = vunpack.c.l.s4 %v414_v1  ;;  %v25_v9 = vcombine.high %v21_v6, %v21_v6  ;;  %v42_v11 = vcombine.high %v22_v7, %v22_v7  ;;  %s415_s0 = smov [#allocation5]   ;;  %vm347_vm0 = vcmask 9216  }
   0xf   :  { %v30_v3 = vshrl.u32 %v29_v0, 7  ;;  %s355_s11 = sshll.u32 %s415_s0, 4  ;;  %s356_s11 = int_to_ptr.vmem [resolvable:$true] %s355_s11 }
  0x10   :  { %v28_v4 = vunpack.c.0.s8 %v27_v2  ;;  %s389_s12 = scalar_lea.vmem %s356_s11, 32  ;;  %p394_p6 = scmp.lt.s32.totalorder %s356_s11, %s356_s11 }
  0x11   :  { %p390_p5 = scmp.ne.s32.totalorder %s356_s11, %s389_s12  ;;  %p395_p7 = scmp.lt.s32.totalorder %s389_s12, %s389_s12 }
  0x12   :  { %v31_v5 = vsub.s32 %v28_v4, %v30_v3 }
  0x13   :  { %p396_p8 = por %p395_p7, %p394_p6 }
  0x14   :  { %v32_v8 = vrot.slane %v21_v6, %v31_v5  ;;  %v49_v10 = vrot.slane %v22_v7, %v31_v5  ;;  %v39_v13 = vrot.slane %v25_v9, %v31_v5  ;;  %v56_v15 = vrot.slane %v42_v11, %v31_v5 }
  0x15   :  { %p397_p9 = pnand %p396_p8, %p390_p5 }
  0x16   :  { %v40_v12 = vcombine.high %v32_v8, %v32_v8  ;;  %v57_v14 = vcombine.high %v49_v10, %v49_v10  ;;  %v41_v16 = vcombine.high %v39_v13, %v39_v13  ;;  %v58_v17 = vcombine.high %v56_v15, %v56_v15 }
  0x18   :  { %97 = vmatprep.subr.mxu0 %v40_v12  ;;  %131 = vmatprep.mubr.f32.mxu0 %v40_v12 }
  0x19   :  { %98 = vmatpush1.xpose.msra.mxu0 %v32_v8  ;;  %167 = vmatprep.subr.mxu1 %v41_v16 }
  0x1a   :  { %237 = vmatprep.subr.mxu0 %v57_v14  ;;  %168 = vmatpush1.xpose.msra.mxu1 %v39_v13 }
  0x1b   :  { %201 = vmatprep.mubr.f32.mxu1 %v41_v16  ;;  %307 = vmatprep.subr.mxu1 %v58_v17 }
  0x1c   :  { %132 = vmatmul.mubr.f32.vlgmr.msra.gmra.mxu0 %v32_v8 }
  0x1d   :  { %238 = vmatpush1.xpose.msra.mxu0 %v49_v10  ;;  %271 = vmatprep.mubr.f32.mxu0 %v57_v14 }
  0x1e   :  { %202 = vmatmul.mubr.f32.vlgmr.msra.gmra.mxu1 %v39_v13 }
  0x1f   :  { %308 = vmatpush1.xpose.msra.mxu1 %v56_v15  ;;  %341 = vmatprep.mubr.f32.mxu1 %v58_v17 }
  0x20   :  { %272 = vmatmul.mubr.f32.vlgmr.msra.gmra.mxu0 %v49_v10 }
  0x22   :  { %342 = vmatmul.mubr.f32.vlgmr.msra.gmra.mxu1 %v56_v15 }
  0xdc   :  { %v133_v18 = vpop.f32.mrf.mxu0 }
  0xde   :  { %v135_v19 = vpop.f32.mrf.mxu0  ;;  %v203_v20 = vpop.f32.mrf.mxu1 }
  0xdf   :  { %v204_v21 = vadd.f32 %v203_v20, %v133_v18 }
  0xe0   :  { %v205_v22 = vpop.f32.mrf.mxu1  ;;  %v273_v23 = vpop.f32.mrf.mxu0 }
  0xe1   :  { %v274_v24 = vadd.f32 %v273_v23, %v204_v21 }
  0xe2   :  { %v275_v25 = vpop.f32.mrf.mxu0  ;;  %v343_v26 = vpop.f32.mrf.mxu1 }
  0xe3   :  { %v344_v27 = vadd.f32 %v343_v26, %v274_v24 }
  0xe4   :  { %v345_v28 = vpop.f32.mrf.mxu1 }
  0xe5   :  { %348 = vst.msk [vmem:[#allocation5] sm:$0x3] %vm347_vm0, %v344_v27 }
  0xe6   :  { %400 = shalt.err (!%p397_p9)
}
  0xe7   :  { %358 = dma.vmem_to_hbm [thread:$0]  %s356_s11, 32, %s433_s1, [#allocation4]  }
  0xe8   :  { %411 = dma.done.wait [#allocation4], 32  }
  0xe9   :  { %412 = vsyncadd [#allocation4], 4294967264 }
  0xea   :  { %362 = vsyncpa [#allocation3], 1 }
  0xeb   :  { %363 = vsyncpa [#allocation4], 1 }

</bundles_post_ra>
